<compile_context>
chip_gen: v7x
topology: tpu7x:2x2x1
jax: 0.10.0
libtpu: 0.0.40
codegen_flags: <defaults>
</compile_context>

<pallas_src>
from itertools import product

import numpy as np
import jax
import jax.numpy as jnp
from jax.experimental import pallas as pl
from jax.experimental.pallas import tpu as pltpu


def rqae_kernel(x_ref, w_in_ref, b_in_ref, cbt_ref, w_out_ref, b_out_ref,
                out_ref, idx_ref, res_ref):
    """One grid step = one (token block, quantizer layer) pair.

    x_ref     : (TM, D)       input tokens (resident across the layer axis)
    w_in_ref  : (1, CD, D)    lin_in weight, pre-transposed (r @ W^T layout)
    b_in_ref  : (1, 1, CD)    lin_in bias
    cbt_ref   : (CD, NCB)     codebook, transposed (scores + one-hot gather)
    w_out_ref : (1, CD, D)    lin_out weight (x @ W layout) -- used on the VPU
    b_out_ref : (1, 1, D)     lin_out bias
    out_ref   : (TM, D)       quantized output (written only on the last layer)
    idx_ref   : (1, TM, 1)    this layer's argmax indices for this token block
    res_ref   : (TM, D)       VMEM scratch carrying the residual across layers
    """
    l = pl.program_id(1)
    n_layers = pl.num_programs(1)
    tm = x_ref.shape[0]
    cd, ncb = cbt_ref.shape
    cdt = cbt_ref.dtype                     # MXU compute dtype (bf16 or f32)

    @pl.when(l == 0)
    def _init():
        res_ref[...] = x_ref[...]

    r = res_ref[...]                                               # (TM, D) f32

    # lin_in: q = r @ w_in^T (contract over D; lane-dense (CD, D) weight tile).
    q = jax.lax.dot_general(
        r.astype(cdt), w_in_ref[0],
        dimension_numbers=(((1,), (1,)), ((), ())),
        preferred_element_type=jnp.float32) + b_in_ref[0]          # (TM, CD)

    # Codebook rows are unit-norm and ||q|| scales all scores equally, so the
    # argmax of the raw dot products equals the argmax of the cosine.
    scores = jnp.dot(q.astype(cdt), cbt_ref[...],
                     preferred_element_type=jnp.float32)           # (TM, NCB)

    # argmax (first occurrence): max, then min index among the maxima.
    m = jnp.max(scores, axis=-1, keepdims=True)                    # (TM, 1)
    lane = jax.lax.broadcasted_iota(jnp.int32, scores.shape, 1)    # (TM, NCB)
    idx = jnp.min(jnp.where(scores == m, lane, jnp.int32(ncb)),
                  axis=-1, keepdims=True)                          # (TM, 1)

    # One-hot gather against the resident transposed codebook (MXU, K=NCB).
    onehot = (lane == idx).astype(cdt)                             # (TM, NCB)
    closest = jax.lax.dot_general(
        onehot, cbt_ref[...],
        dimension_numbers=(((1,), (1,)), ((), ())),
        preferred_element_type=jnp.float32)                        # (TM, CD) f32

    # lin_out as an unrolled VPU broadcast-FMA (CD is a tiny static constant):
    # keeps the K=CD contraction off the MXU entirely.
    w_out = w_out_ref[0]                                           # (CD, D) f32
    dec = closest[:, 0:1] * w_out[0:1, :]
    for c in range(1, cd):
        dec = dec + closest[:, c:c + 1] * w_out[c:c + 1, :]
    dec = dec + b_out_ref[0]                                       # (TM, D) f32

    # Residual update (f32); indices written directly (tiny per-layer block).
    res_new = r - dec
    res_ref[...] = res_new
    idx_ref[...] = idx.reshape(1, tm, 1)

    # quantized_out == sum of all decoded layers == x - final residual.
    @pl.when(l == n_layers - 1)
    def _finalize():
        out_ref[...] = x_ref[...] - res_new


def rqae_forward(x, w_in, b_in, codebook, w_out, b_out, *, tm=512,
                 use_bf16=True, vmem_limit_bytes=48 * 1024 * 1024):
    """RQAE forward. Returns (quantized_out (B,S,D), indices (B,S,NQ) int32).

    tm: token tile. 512 is a safe default; on v5e/v6e (128 MiB VMEM) tm=1024
    with vmem_limit_bytes ~80-96 MiB cuts weight-restream traffic further; on
    v7x (64 MiB per TC) keep tm<=512 and N//tm >= 2 so both cores get work.
    use_bf16: feed the MXU bf16 operands (residual / outputs / accumulation
    stay f32). Nearest-codebook indices may flip on near-ties vs f32.
    """
    B, S, D = x.shape
    NQ, D2, CD = w_in.shape
    assert D2 == D
    NCB = codebook.shape[0]
    N = B * S

    # Clamp the tile to the token count (toy shapes), keep it 8-aligned when
    # possible, and pad the token axis up to a whole number of tiles.
    tm_eff = int(min(tm, N))
    if tm_eff >= 8:
        tm_eff -= tm_eff % 8
    n_blocks = -(-N // tm_eff)
    n_pad = n_blocks * tm_eff

    xf = x.reshape(N, D).astype(jnp.float32)
    if n_pad != N:
        xf = jnp.pad(xf, ((0, n_pad - N), (0, 0)))

    cdt = jnp.bfloat16 if use_bf16 else jnp.float32
    w_in_t = jnp.transpose(w_in, (0, 2, 1)).astype(cdt)   # (NQ, CD, D) lane-dense
    b_in3 = b_in.reshape(NQ, 1, CD).astype(jnp.float32)
    w_out_f = w_out.astype(jnp.float32)                   # VPU path stays f32
    b_out3 = b_out.reshape(NQ, 1, D).astype(jnp.float32)
    cb_t = codebook.T.astype(cdt)                         # (CD, NCB) shared tile

    grid = (n_blocks, NQ)
    out, idx = pl.pallas_call(
        rqae_kernel,
        out_shape=(
            jax.ShapeDtypeStruct((n_pad, D), jnp.float32),
            jax.ShapeDtypeStruct((NQ, n_pad, 1), jnp.int32),
        ),
        grid_spec=pltpu.PrefetchScalarGridSpec(
            num_scalar_prefetch=0,
            grid=grid,
            in_specs=[
                pl.BlockSpec((tm_eff, D), lambda i, l: (i, 0)),        # x
                pl.BlockSpec((1, CD, D), lambda i, l: (l, 0, 0)),      # w_in^T
                pl.BlockSpec((1, 1, CD), lambda i, l: (l, 0, 0)),      # b_in
                pl.BlockSpec((CD, NCB), lambda i, l: (0, 0)),          # cb^T
                pl.BlockSpec((1, CD, D), lambda i, l: (l, 0, 0)),      # w_out
                pl.BlockSpec((1, 1, D), lambda i, l: (l, 0, 0)),       # b_out
            ],
            out_specs=[
                pl.BlockSpec((tm_eff, D), lambda i, l: (i, 0)),        # out
                pl.BlockSpec((1, tm_eff, 1), lambda i, l: (l, i, 0)),  # indices
            ],
            scratch_shapes=[pltpu.VMEM((tm_eff, D), jnp.float32)],     # residual
        ),
        compiler_params=pltpu.CompilerParams(
            dimension_semantics=("parallel", "arbitrary"),
            vmem_limit_bytes=vmem_limit_bytes),
    )(xf, w_in_t, b_in3, cb_t, w_out_f, b_out3)

    q_out = out[:N].reshape(B, S, D)
    indices = jnp.transpose(idx[:, :N, 0]).reshape(B, S, NQ)
    return q_out, indices


def make_fsq_codebook(codebook_size, codebook_dim):
    """round_fsq codebook: cartesian grid on linspace(-1,1), row-normalized."""
    grid = np.linspace(-1.0, 1.0, codebook_size)
    cb = np.array(list(product(grid, repeat=codebook_dim)), dtype=np.float64)
    norms = np.linalg.norm(cb, axis=-1, keepdims=True)
    norms = np.where(norms == 0, 1.0, norms)
    cb = cb / norms
    return jnp.asarray(cb, dtype=jnp.float32)


def rqae_reference(x, w_in, b_in, codebook, w_out, b_out):
    """Pure-JAX reference mirroring the PyTorch forward pass."""
    NQ = w_in.shape[0]
    residual = x
    qout = jnp.zeros_like(x)
    idxs = []
    hi = jax.lax.Precision.HIGHEST
    for l in range(NQ):
        q = jnp.einsum("bsd,dc->bsc", residual, w_in[l], precision=hi) + b_in[l]
        xn = q / jnp.linalg.norm(q, axis=-1, keepdims=True)
        cos = jnp.einsum("bsc,nc->bsn", xn, codebook, precision=hi)
        idx = jnp.argmax(cos, axis=-1)
        closest = codebook[idx]
        dec = jnp.einsum("bsc,cd->bsd", closest, w_out[l], precision=hi) + b_out[l]
        residual = residual - dec
        qout = qout + dec
        idxs.append(idx)
    return qout, jnp.stack(idxs, axis=-1).astype(jnp.int32)


if __name__ == "__main__":
    # Small, self-consistent shapes (the real model uses dim=2304, nq=1024).
    B, S = 2, 8
    DIM = 32
    CODEBOOK_DIM = 4
    CODEBOOK_SIZE = 5
    NUM_QUANTIZERS = 8
    NCB = CODEBOOK_SIZE ** CODEBOOK_DIM  # 625

    key = jax.random.PRNGKey(0)
    kx, kwi, kbi, kwo, kbo = jax.random.split(key, 5)

    bound_in = 1.0 / np.sqrt(DIM)
    bound_out = 1.0 / np.sqrt(CODEBOOK_DIM)
    w_in = jax.random.uniform(kwi, (NUM_QUANTIZERS, DIM, CODEBOOK_DIM),
                              jnp.float32, -bound_in, bound_in)
    b_in = jax.random.uniform(kbi, (NUM_QUANTIZERS, CODEBOOK_DIM),
                              jnp.float32, -bound_in, bound_in)
    w_out = jax.random.uniform(kwo, (NUM_QUANTIZERS, CODEBOOK_DIM, DIM),
                               jnp.float32, -bound_out, bound_out)
    b_out = jax.random.uniform(kbo, (NUM_QUANTIZERS, DIM),
                               jnp.float32, -bound_out, bound_out)
    # In the torch module, copy_ broadcasts the same FSQ grid to every quantizer.
    codebook = make_fsq_codebook(CODEBOOK_SIZE, CODEBOOK_DIM)  # (625, 4)

    x = jax.random.normal(kx, (B, S, DIM), jnp.float32)

    # Reference (pure JAX).
    q_ref, idx_ref = rqae_reference(x, w_in, b_in, codebook, w_out, b_out)

    # f32 MXU path (exact-index comparison against the f32 reference).
    q_out, indices = rqae_forward(x, w_in, b_in, codebook, w_out, b_out,
                                  use_bf16=False)
    q_out = jax.block_until_ready(q_out)
    indices = jax.block_until_ready(indices)
    assert q_out.shape == (B, S, DIM) and indices.shape == (B, S, NUM_QUANTIZERS)
    assert bool(jnp.all(indices == idx_ref)), "index mismatch vs reference"
    assert bool(jnp.allclose(q_out, q_ref, atol=2e-3, rtol=2e-3)), \
        "quantized output mismatch vs reference"

    # Smaller tile to exercise the multi-token-block (parallel) grid path.
    q_out2, indices2 = rqae_forward(x, w_in, b_in, codebook, w_out, b_out,
                                    tm=8, use_bf16=False)
    q_out2 = jax.block_until_ready(q_out2)
    indices2 = jax.block_until_ready(indices2)
    assert bool(jnp.all(indices2 == idx_ref)), "index mismatch (tm=8)"
    assert bool(jnp.allclose(q_out2, q_ref, atol=2e-3, rtol=2e-3)), \
        "quantized output mismatch (tm=8)"

    # bf16 MXU path (perf default at real shapes): near-ties may legitimately
    # resolve to a different codebook index than the f32 reference, so this is
    # a smoke test (shapes, finiteness, index range) rather than exact match.
    q_out3, indices3 = rqae_forward(x, w_in, b_in, codebook, w_out, b_out,
                                    use_bf16=True)
    q_out3 = jax.block_until_ready(q_out3)
    indices3 = jax.block_until_ready(indices3)
    assert q_out3.shape == (B, S, DIM) and indices3.shape == (B, S, NUM_QUANTIZERS)
    assert bool(jnp.all(jnp.isfinite(q_out3))), "non-finite bf16 output"
    assert bool(jnp.all((indices3 >= 0) & (indices3 < NCB))), "bf16 index range"

    # TODO(synk): training-time gumbel-softmax sampling (temperature > 0) and
    # codebook_counts EMA updates are not implemented (eval/argmax path only).
    print("KERNEL_OK")
</pallas_src>

<mosaic_0001>
module attributes {stable_mosaic.version = 11 : i64} {
  func.func @rqae_kernel(%arg0: i32, %arg1: i32, %arg2: memref<16x32xf32, #tpu.memory_space<vmem>>, %arg3: memref<1x4x32xf32, #tpu.memory_space<vmem>>, %arg4: memref<1x1x4xf32, #tpu.memory_space<vmem>>, %arg5: memref<4x625xf32, #tpu.memory_space<vmem>>, %arg6: memref<1x4x32xf32, #tpu.memory_space<vmem>>, %arg7: memref<1x1x32xf32, #tpu.memory_space<vmem>>, %arg8: memref<16x32xf32, #tpu.memory_space<vmem>>, %arg9: memref<1x16x1xi32, #tpu.memory_space<vmem>>, %arg10: memref<16x32xf32, #tpu.memory_space<vmem>>) attributes {dimension_semantics = [#tpu.dimension_semantics<parallel>, #tpu.dimension_semantics<arbitrary>], iteration_bounds = array<i64: 1, 8>, scalar_prefetch = 0 : i64, scratch_operands = 1 : i64, tpu.core_type = #tpu.core_type<tc>, window_params = [{transform_indices = @transform_0, window_bounds = array<i64: 16, 32>}, {transform_indices = @transform_1, window_bounds = array<i64: 1, 4, 32>}, {transform_indices = @transform_2, window_bounds = array<i64: 1, 1, 4>}, {pipeline_mode = #tpu.pipeline_mode<synchronous>, transform_indices = @transform_3, window_bounds = array<i64: 4, 625>}, {transform_indices = @transform_4, window_bounds = array<i64: 1, 4, 32>}, {transform_indices = @transform_5, window_bounds = array<i64: 1, 1, 32>}, {transform_indices = @transform_6, window_bounds = array<i64: 16, 32>}, {transform_indices = @transform_7, window_bounds = array<i64: 1, 16, 1>}]} {
    %c0_i32 = arith.constant 0 : i32
    %0 = arith.cmpi eq, %arg1, %c0_i32 : i32
    %1 = arith.extui %0 : i1 to i32
    %c0_i32_0 = arith.constant 0 : i32
    %2 = arith.cmpi ne, %1, %c0_i32_0 : i32
    scf.if %2 {
      %c0_28 = arith.constant 0 : index
      %c0_29 = arith.constant 0 : index
      %64 = vector.load %arg2[%c0_28, %c0_29] : memref<16x32xf32, #tpu.memory_space<vmem>>, vector<16x32xf32>
      %c0_30 = arith.constant 0 : index
      %c0_31 = arith.constant 0 : index
      %65 = vector.load %arg10[%c0_30, %c0_31] : memref<16x32xf32, #tpu.memory_space<vmem>>, vector<16x32xf32>
      tpu.vector_store %arg10[%c0_30, %c0_31], %64 {strides = array<i32>} : memref<16x32xf32, #tpu.memory_space<vmem>>, vector<16x32xf32>,
    } else {
    }
    %c0 = arith.constant 0 : index
    %c0_1 = arith.constant 0 : index
    %3 = vector.load %arg10[%c0, %c0_1] : memref<16x32xf32, #tpu.memory_space<vmem>>, vector<16x32xf32>
    %c0_2 = arith.constant 0 : index
    %c0_3 = arith.constant 0 : index
    %c0_4 = arith.constant 0 : index
    %4 = vector.load %arg3[%c0_2, %c0_3, %c0_4] : memref<1x4x32xf32, #tpu.memory_space<vmem>>, vector<1x4x32xf32>
    %5 = vector.shape_cast %4 : vector<1x4x32xf32> to vector<4x32xf32>
    %cst = arith.constant dense<0.000000e+00> : vector<16x4xf32>
    %6 = tpu.matmul %3, %5, %cst {dimension_numbers = #tpu.dot_dimension_numbers<[1], [1], [0], [0], [0, 0, 1, 0], [], []>} : vector<16x32xf32>, vector<4x32xf32>, vector<16x4xf32> -> vector<16x4xf32>
    %c0_5 = arith.constant 0 : index
    %c0_6 = arith.constant 0 : index
    %c0_7 = arith.constant 0 : index
    %7 = vector.load %arg4[%c0_5, %c0_6, %c0_7] : memref<1x1x4xf32, #tpu.memory_space<vmem>>, vector<1x1x4xf32>
    %8 = vector.shape_cast %7 : vector<1x1x4xf32> to vector<1x4xf32>
    %9 = vector.broadcast %8 : vector<1x4xf32> to vector<16x4xf32>
    %10 = arith.addf %6, %9 : vector<16x4xf32>
    %c0_8 = arith.constant 0 : index
    %c0_9 = arith.constant 0 : index
    %11 = vector.load %arg5[%c0_8, %c0_9] : memref<4x625xf32, #tpu.memory_space<vmem>>, vector<4x625xf32>
    %cst_10 = arith.constant dense<0.000000e+00> : vector<16x625xf32>
    %12 = tpu.matmul %10, %11, %cst_10 {dimension_numbers = #tpu.dot_dimension_numbers<[1], [0], [0], [1], [0, 0, 1, 1], [], []>} : vector<16x4xf32>, vector<4x625xf32>, vector<16x625xf32> -> vector<16x625xf32>
    %cst_11 = arith.constant dense<0xFF800000> : vector<16xf32>
    %13 = vector.multi_reduction <maximumf>, %12, %cst_11 [1] : vector<16x625xf32> to vector<16xf32>
    %14 = vector.shape_cast %13 : vector<16xf32> to vector<16x1xf32>
    %15 = tpu.iota {dimensions = array<i32: 1>} : vector<16x625xi32>
    %16 = vector.broadcast %14 : vector<16x1xf32> to vector<16x625xf32>
    %17 = arith.cmpf oeq, %12, %16 : vector<16x625xf32>
    %c625_i32 = arith.constant 625 : i32
    %18 = vector.broadcast %c625_i32 : i32 to vector<16x625xi32>
    %19 = arith.select %17, %15, %18 : vector<16x625xi1>, vector<16x625xi32>
    %cst_12 = arith.constant dense<2147483647> : vector<16xi32>
    %20 = vector.multi_reduction <minsi>, %19, %cst_12 [1] : vector<16x625xi32> to vector<16xi32>
    %21 = vector.shape_cast %20 : vector<16xi32> to vector<16x1xi32>
    %22 = vector.broadcast %21 : vector<16x1xi32> to vector<16x625xi32>
    %23 = arith.cmpi eq, %15, %22 : vector<16x625xi32>
    %24 = arith.extui %23 : vector<16x625xi1> to vector<16x625xi32>
    %25 = arith.sitofp %24 : vector<16x625xi32> to vector<16x625xf32>
    %c0_13 = arith.constant 0 : index
    %c0_14 = arith.constant 0 : index
    %26 = vector.load %arg5[%c0_13, %c0_14] : memref<4x625xf32, #tpu.memory_space<vmem>>, vector<4x625xf32>
    %cst_15 = arith.constant dense<0.000000e+00> : vector<16x4xf32>
    %27 = tpu.matmul %25, %26, %cst_15 {dimension_numbers = #tpu.dot_dimension_numbers<[1], [1], [0], [0], [0, 0, 1, 0], [], []>} : vector<16x625xf32>, vector<4x625xf32>, vector<16x4xf32> -> vector<16x4xf32>
    %c0_16 = arith.constant 0 : index
    %c0_17 = arith.constant 0 : index
    %c0_18 = arith.constant 0 : index
    %28 = vector.load %arg6[%c0_16, %c0_17, %c0_18] : memref<1x4x32xf32, #tpu.memory_space<vmem>>, vector<1x4x32xf32>
    %29 = vector.shape_cast %28 : vector<1x4x32xf32> to vector<4x32xf32>
    %30 = vector.extract_strided_slice %27 {offsets = [0, 0], sizes = [16, 1], strides = [1, 1]} : vector<16x4xf32> to vector<16x1xf32>
    %31 = vector.extract_strided_slice %29 {offsets = [0, 0], sizes = [1, 32], strides = [1, 1]} : vector<4x32xf32> to vector<1x32xf32>
    %32 = vector.broadcast %30 : vector<16x1xf32> to vector<16x32xf32>
    %33 = vector.broadcast %31 : vector<1x32xf32> to vector<16x32xf32>
    %34 = arith.mulf %32, %33 : vector<16x32xf32>
    %35 = vector.extract_strided_slice %27 {offsets = [0, 1], sizes = [16, 1], strides = [1, 1]} : vector<16x4xf32> to vector<16x1xf32>
    %36 = vector.extract_strided_slice %29 {offsets = [1, 0], sizes = [1, 32], strides = [1, 1]} : vector<4x32xf32> to vector<1x32xf32>
    %37 = vector.broadcast %35 : vector<16x1xf32> to vector<16x32xf32>
    %38 = vector.broadcast %36 : vector<1x32xf32> to vector<16x32xf32>
    %39 = arith.mulf %37, %38 : vector<16x32xf32>
    %40 = arith.addf %34, %39 : vector<16x32xf32>
    %41 = vector.extract_strided_slice %27 {offsets = [0, 2], sizes = [16, 1], strides = [1, 1]} : vector<16x4xf32> to vector<16x1xf32>
    %42 = vector.extract_strided_slice %29 {offsets = [2, 0], sizes = [1, 32], strides = [1, 1]} : vector<4x32xf32> to vector<1x32xf32>
    %43 = vector.broadcast %41 : vector<16x1xf32> to vector<16x32xf32>
    %44 = vector.broadcast %42 : vector<1x32xf32> to vector<16x32xf32>
    %45 = arith.mulf %43, %44 : vector<16x32xf32>
    %46 = arith.addf %40, %45 : vector<16x32xf32>
    %47 = vector.extract_strided_slice %27 {offsets = [0, 3], sizes = [16, 1], strides = [1, 1]} : vector<16x4xf32> to vector<16x1xf32>
    %48 = vector.extract_strided_slice %29 {offsets = [3, 0], sizes = [1, 32], strides = [1, 1]} : vector<4x32xf32> to vector<1x32xf32>
    %49 = vector.broadcast %47 : vector<16x1xf32> to vector<16x32xf32>
    %50 = vector.broadcast %48 : vector<1x32xf32> to vector<16x32xf32>
    %51 = arith.mulf %49, %50 : vector<16x32xf32>
    %52 = arith.addf %46, %51 : vector<16x32xf32>
    %c0_19 = arith.constant 0 : index
    %c0_20 = arith.constant 0 : index
    %c0_21 = arith.constant 0 : index
    %53 = vector.load %arg7[%c0_19, %c0_20, %c0_21] : memref<1x1x32xf32, #tpu.memory_space<vmem>>, vector<1x1x32xf32>
    %54 = vector.shape_cast %53 : vector<1x1x32xf32> to vector<1x32xf32>
    %55 = vector.broadcast %54 : vector<1x32xf32> to vector<16x32xf32>
    %56 = arith.addf %52, %55 : vector<16x32xf32>
    %57 = arith.subf %3, %56 : vector<16x32xf32>
    %c0_22 = arith.constant 0 : index
    %c0_23 = arith.constant 0 : index
    %58 = vector.load %arg10[%c0_22, %c0_23] : memref<16x32xf32, #tpu.memory_space<vmem>>, vector<16x32xf32>
    tpu.vector_store %arg10[%c0_22, %c0_23], %57 {strides = array<i32>} : memref<16x32xf32, #tpu.memory_space<vmem>>, vector<16x32xf32>,
    %59 = vector.shape_cast %21 : vector<16x1xi32> to vector<1x16x1xi32>
    %c0_24 = arith.constant 0 : index
    %c0_25 = arith.constant 0 : index
    %c0_26 = arith.constant 0 : index
    %60 = vector.load %arg9[%c0_24, %c0_25, %c0_26] : memref<1x16x1xi32, #tpu.memory_space<vmem>>, vector<1x16x1xi32>
    tpu.vector_store %arg9[%c0_24, %c0_25, %c0_26], %59 {strides = array<i32>} : memref<1x16x1xi32, #tpu.memory_space<vmem>>, vector<1x16x1xi32>,
    %c7_i32 = arith.constant 7 : i32
    %61 = arith.cmpi eq, %arg1, %c7_i32 : i32
    %62 = arith.extui %61 : i1 to i32
    %c0_i32_27 = arith.constant 0 : i32
    %63 = arith.cmpi ne, %62, %c0_i32_27 : i32
    scf.if %63 {
      %c0_28 = arith.constant 0 : index
      %c0_29 = arith.constant 0 : index
      %64 = vector.load %arg2[%c0_28, %c0_29] : memref<16x32xf32, #tpu.memory_space<vmem>>, vector<16x32xf32>
      %65 = arith.subf %64, %57 : vector<16x32xf32>
      %c0_30 = arith.constant 0 : index
      %c0_31 = arith.constant 0 : index
      %66 = vector.load %arg8[%c0_30, %c0_31] : memref<16x32xf32, #tpu.memory_space<vmem>>, vector<16x32xf32>
      tpu.vector_store %arg8[%c0_30, %c0_31], %65 {strides = array<i32>} : memref<16x32xf32, #tpu.memory_space<vmem>>, vector<16x32xf32>,
    } else {
    }
    return
  }
  func.func @transform_0(%arg0: i32, %arg1: i32) -> (i32, i32) {
    %c0_i32 = arith.constant 0 : i32
    %c0_i32_0 = arith.constant 0 : i32
    return %arg0, %c0_i32 : i32, i32
  }
  func.func @transform_1(%arg0: i32, %arg1: i32) -> (i32, i32, i32) {
    %c0_i32 = arith.constant 0 : i32
    %c0_i32_0 = arith.constant 0 : i32
    %c0_i32_1 = arith.constant 0 : i32
    return %arg1, %c0_i32, %c0_i32_0 : i32, i32, i32
  }
  func.func @transform_2(%arg0: i32, %arg1: i32) -> (i32, i32, i32) {
    %c0_i32 = arith.constant 0 : i32
    %c0_i32_0 = arith.constant 0 : i32
    %c0_i32_1 = arith.constant 0 : i32
    return %arg1, %c0_i32, %c0_i32_0 : i32, i32, i32
  }
  func.func @transform_3(%arg0: i32, %arg1: i32) -> (i32, i32) {
    %c0_i32 = arith.constant 0 : i32
    %c0_i32_0 = arith.constant 0 : i32
    %c0_i32_1 = arith.constant 0 : i32
    return %c0_i32, %c0_i32_0 : i32, i32
  }
  func.func @transform_4(%arg0: i32, %arg1: i32) -> (i32, i32, i32) {
    %c0_i32 = arith.constant 0 : i32
    %c0_i32_0 = arith.constant 0 : i32
    %c0_i32_1 = arith.constant 0 : i32
    return %arg1, %c0_i32, %c0_i32_0 : i32, i32, i32
  }
  func.func @transform_5(%arg0: i32, %arg1: i32) -> (i32, i32, i32) {
    %c0_i32 = arith.constant 0 : i32
    %c0_i32_0 = arith.constant 0 : i32
    %c0_i32_1 = arith.constant 0 : i32
    return %arg1, %c0_i32, %c0_i32_0 : i32, i32, i32
  }
  func.func @transform_6(%arg0: i32, %arg1: i32) -> (i32, i32) {
    %c0_i32 = arith.constant 0 : i32
    %c0_i32_0 = arith.constant 0 : i32
    return %arg0, %c0_i32 : i32, i32
  }
  func.func @transform_7(%arg0: i32, %arg1: i32) -> (i32, i32, i32) {
    %c0_i32 = arith.constant 0 : i32
    %c0_i32_0 = arith.constant 0 : i32
    return %arg1, %arg0, %c0_i32 : i32, i32, i32
  }
}

</mosaic_0001>

<bundles_post_ra>
// kernel: tpu_custom_call.1
= control target key start
LH: loop header
LB: loop body
LE: loop exit
PB: predicated region body
PF: predicated region fallthrough
CT: control target
= control target key end

     0   :  { %s2152_s0 = inlined_call_operand.hbm [shape: f32[16,32], index: 0, kind: input, shape index: {}]   ;;  %s2153_s1 = inlined_call_operand.hbm [shape: f32[8,4,32], index: 1, kind: input, shape index: {}]   ;;  %s2154_s2 = inlined_call_operand.vmem [shape: f32[8,1,4], index: 2, kind: input, shape index: {}]   ;;  %s2155_s3 = inlined_call_operand.vmem [shape: f32[4,625], index: 3, kind: input, shape index: {}]   ;;  %s2156_s4 = inlined_call_operand.hbm [shape: f32[8,4,32], index: 4, kind: input, shape index: {}]   ;;  %s2157_s5 = inlined_call_operand.vmem [shape: f32[8,1,32], index: 5, kind: input, shape index: {}]   ;;  %s2158_s6 = inlined_call_operand.hbm [shape: f32[16,32], index: 6, kind: output, shape index: {0}]   ;;  %s2159_s7 = inlined_call_operand.vmem [shape: s32[8,16,1], index: 7, kind: output, shape index: {1}]  }
   0x1   :  { %2164 = sst [smem:[#allocation13_spill]] %s2153_s1 }
   0x2   :  { %2165 = sst [smem:[#allocation14_spill]] %s2156_s4 }
   0x3   :  { %13 = vsyncpa [#allocation4], 0 }
   0x4   :  { %14 = vsyncpa [#allocation7], 0 }
   0x5   :  { %16 = vsyncpa [#allocation7 + $0x1], 0 }
   0x6   :  { %17 = vsyncpa [#allocation5], 0  ;;  %s1803_s24 = smov 0   ;;  %s1805_s25 = smov 0  }
   0x7   :  { %s1807_s26 = smov 0   ;;  %s1809_s27 = smov 0  }
   0x8   :  { %s1811_s28 = smov 0   ;;  %s1813_s29 = smov 0  }
   0x9 LB: > { %s32_s30 = sadd.s32 1, %s1743_s28  ;;  %s68_s8 = sadd.s32 1, %s1735_s26  ;;  %s1747_s29 = sphi %s1813_s29, %s23_s29   ;;  %s1743_s28 = sphi %s1811_s28, %s2181_s28   ;;  %s1739_s27 = sphi %s1809_s27, %s2180_s27   ;;  %s1735_s26 = sphi %s1807_s26, %s2179_s26   ;;  %s1731_s25 = sphi %s1805_s25, %s2178_s25   ;;  %s1727_s24 = sphi %s1803_s24, %s2177_s24  }
   0xa   : > { %p33_p0 = scmp.ge.s32.totalorder %s32_s30, 8  ;;  %p75_p1 = scmp.ne.s32.totalorder %s1735_s26, %s1731_s25 }
   0xb   : > { %p76_p2 = scmp.eq.s32.totalorder %s1747_s29, 0  ;;  %p1500_p4 = scmp.lt.s32.totalorder %s1747_s29, 8 }
   0xc   : > { %s2183_s30 = smov (%p33_p0, %s32_s30), 0  ;;  %s277_s10 = sand.u32 1, %s1747_s29  }
   0xd   : > { %p77_p3 = por %p76_p2, %p75_p1  ;;  %s65_s9 = ssub.s32 %s1743_s28, %s2183_s30 }
   0xe   : > { %p66_p5 = scmp.eq.s32.totalorder %s65_s9, 0  ;;  %s279_s11 = sand.u32 1, %s1735_s26  }
   0xf   : > { %s1393_s12 = sshll.u32 %s1743_s28, 6  ;;  %s1849_s14 = sshll.u32 %s279_s11, 2 }
  0x10   : > { %s1847_s13 = scalar_select %p66_p5, %s1735_s26, %s68_s8  }
  0x11   : > { %s2166_s1 = sld [smem:[#allocation13_spill]]  ;;  %p1858_p6 = pnand %p1500_p4, %p77_p3 }
  0x12   : > { %s281_s19 = scalar_lea.vmem [#allocation6], %s1849_s14  ;;  %s1865_s21 = scalar_lea.sflag [#allocation7], %s277_s10 }
  0x13   : > { %s288_s20 = sshll.u32 %s281_s19, 4  ;;  %p1577_p8 = pneg %p1858_p6  ;;  %s1863_s20 = int_to_ptr.vmem [resolvable:$true] %s288_s20 }
  0x17   : > { %s1856_s17 = scalar_lea.hbm %s2166_s1, %s1393_s12  ;;  %s1580_s9 = scalar_lea.hbm %s2166_s1, 512 }
  0x18   : > { %s1575_s22 = scalar_lea.hbm %s1856_s17, 64  ;;  %p1581_p11 = scmp.lt.u32.totalorder %s1856_s17, %s2166_s1 }
  0x19   : > { %p1576_p7 = scmp.ne.s32.totalorder %s1856_s17, %s1575_s22  ;;  %p1582_p12 = scmp.lt.u32.totalorder %s1580_s9, %s1575_s22 }
  0x1a   : > { %p1584_p0 = scmp.lt.u32.totalorder %s1575_s22, %s1856_s17 }
  0x1b   : > { %p1578_p9 = pnand %p1577_p8, %p1576_p7  ;;  %p1583_p13 = por %p1582_p12, %p1581_p11 }
  0x1d   : > { %p1579_p10 = pneg %p1578_p9  ;;  %p1585_p1 = por %p1584_p0, %p1583_p13 }
  0x1f   : > { %p1586_p2 = pnand %p1585_p1, %p1579_p10 }
  0x21   : > { %1589 = shalt.err (!%p1586_p2)
}
  0x22   : > { %s1590_s10 = scalar_lea.vmem %s1863_s20, 64  ;;  %s1749_s16 = smov [#allocation6]  }
  0x23   : > { %p1591_p3 = scmp.ne.s32.totalorder %s1863_s20, %s1590_s10  ;;  %s1595_s19 = sshll.u32 %s1749_s16, 4  ;;  %s1596_s19 = int_to_ptr.vmem [resolvable:$false] %s1595_s19 }
  0x24   : > { %s1597_s23 = scalar_lea.vmem %s1596_s19, 128  ;;  %p1598_p7 = scmp.lt.s32.totalorder %s1863_s20, %s1596_s19 }
  0x25   : > { %p1593_p4 = pnand %p1591_p3, %p1577_p8  ;;  %p1599_p9 = scmp.lt.s32.totalorder %s1597_s23, %s1590_s10 }
  0x27   : > { %p1594_p5 = pneg %p1593_p4  ;;  %p1600_p11 = por %p1599_p9, %p1598_p7 }
  0x29   : > { %p1601_p12 = pnand %p1600_p11, %p1594_p5 }
  0x2b   : > { %1604 = shalt.err (!%p1601_p12)
}
  0x2c   : > { %1495 = dma.hbm_to_vmem [thread:$0]  (!%p1858_p6), %s1856_s17, 64, %s1863_s20, %s1865_s21  }
  0x2d   : > { %s2168_s4 = sld [smem:[#allocation14_spill]]  ;;  %s1901_s11 = sadd.s32 4294967295, %s1747_s29  }
  0x2e   : > { %p81_p10 = scmp.ne.s32.totalorder %s1731_s25, %s1727_s24  ;;  %p2160_p13 = scmp.eq.s32.totalorder %s1901_s11, 0 }
  0x2f   : > { %p1389_p0 = scmp.ge.s32.totalorder %s1747_s29, 1  ;;  %p245_p1 = scmp.lt.s32.totalorder %s1747_s29, 9 }
  0x30   : > { %p1910_p2 = por %p2160_p13, %p81_p10  ;;  %s1750_s20 = smov [#allocation3]  }
  0x31   : > { %p1914_p3 = pnand %p1389_p0, %p245_p1  ;;  %s260_s15 = sshll.u32 %s1750_s20, 4  ;;  %s1920_s15 = int_to_ptr.vmem [resolvable:$true] %s260_s15 }
  0x32   : > { %s2169_s17 = scalar_select %p1910_p2, 1, 0 }
  0x33   : > { %s1898_s9 = scalar_lea.hbm %s2168_s4, %s1393_s12  ;;  %p1488_p4 = pneg %p1914_p3 }
  0x34   : > { %s2170_s12 = scalar_select %p1914_p3, 1, 0 }
  0x35   : > { %s305_s24 = scalar_lea.vmem [#allocation8], %s1849_s14  ;;  %p1925_p5 = pnand %p1488_p4, %p2160_p13 }
  0x36   : > { %s312_s10 = sshll.u32 %s305_s24, 4  ;;  %s1605_s19 = scalar_lea.hbm %s1898_s9, 64  ;;  %s313_s10 = int_to_ptr.vmem [resolvable:$true] %s312_s10 }
  0x37   : > { %s2171_s16 = scalar_select %p1925_p5, 1, 0 }
  0x38   : > { %p1606_p7 = scmp.ne.s32.totalorder %s1898_s9, %s1605_s19  ;;  %s1610_s8 = scalar_lea.hbm %s2168_s4, 512 }
  0x39   : > { %p1611_p12 = scmp.lt.u32.totalorder %s1898_s9, %s2168_s4  ;;  %p1612_p10 = scmp.lt.u32.totalorder %s1610_s8, %s1605_s19 }
  0x3a   : > { %p1608_p9 = pnand %p1606_p7, %p1577_p8  ;;  %p1614_p1 = scmp.lt.u32.totalorder %s1605_s19, %s1898_s9 }
  0x3b   : > { %p1613_p0 = por %p1612_p10, %p1611_p12 }
  0x3c   : > { %p1609_p11 = pneg %p1608_p9 }
  0x3d   : > { %p1615_p4 = por %p1614_p1, %p1613_p0 }
  0x3f   : > { %p1616_p13 = pnand %p1615_p4, %p1609_p11 }
  0x41   : > { %1619 = shalt.err (!%p1616_p13)
}
  0x42   : > { %s1620_s14 = scalar_lea.vmem %s313_s10, 64  ;;  %s1751_s24 = smov [#allocation8]  }
  0x43   : > { %p1621_p2 = scmp.ne.s32.totalorder %s313_s10, %s1620_s14  ;;  %s1625_s23 = sshll.u32 %s1751_s24, 4  ;;  %s1626_s23 = int_to_ptr.vmem [resolvable:$false] %s1625_s23 }
  0x44   : > { %s1627_s22 = scalar_lea.vmem %s1626_s23, 128  ;;  %p1628_p3 = scmp.lt.s32.totalorder %s313_s10, %s1626_s23 }
  0x45   : > { %p1623_p7 = pnand %p1621_p2, %p1577_p8  ;;  %p1629_p5 = scmp.lt.s32.totalorder %s1627_s22, %s1620_s14 }
  0x47   : > { %p1624_p9 = pneg %p1623_p7  ;;  %p1630_p10 = por %p1629_p5, %p1628_p3 }
  0x49   : > { %p1631_p12 = pnand %p1630_p10, %p1624_p9 }
  0x4b   : > { %1634 = shalt.err (!%p1631_p12)
}
  0x4c   : > { %1498 = dma.hbm_to_vmem [thread:$0]  (!%p1858_p6), %s1898_s9, 64, %s313_s10, %s1865_s21  }
  0x4d   : > { %s1635_s8 = scalar_lea.hbm %s2152_s0, 256  ;;  %p2172_p13 = scmp.ne.s32.totalorder %s2171_s16, 0 }
  0x4e   : > { %p1636_p8 = scmp.ne.s32.totalorder %s2152_s0, %s1635_s8  ;;  %p1642_p5 = scmp.lt.u32.totalorder %s1635_s8, %s2152_s0 }
  0x4f   : > { %p1637_p2 = pneg %p2172_p13 }
  0x51   : > { %p1638_p11 = pnand %p1637_p2, %p1636_p8 }
  0x53   : > { %p1639_p3 = pneg %p1638_p11 }
  0x55   : > { %p1644_p0 = pnand %p1642_p5, %p1639_p3 }
  0x57   : > { %1647 = shalt.err (!%p1644_p0)
}
  0x58   : > { %s1648_s18 = scalar_lea.vmem %s1920_s15, 256  ;;  %p1656_p7 = scmp.lt.s32.totalorder %s1920_s15, %s1920_s15 }
  0x59   : > { %p1649_p6 = scmp.ne.s32.totalorder %s1920_s15, %s1648_s18  ;;  %p1657_p9 = scmp.lt.s32.totalorder %s1648_s18, %s1648_s18 }
  0x5b   : > { %p1651_p1 = pnand %p1649_p6, %p1637_p2  ;;  %p1658_p10 = por %p1657_p9, %p1656_p7 }
  0x5d   : > { %p1652_p4 = pneg %p1651_p1 }
  0x5f   : > { %p1659_p12 = pnand %p1658_p10, %p1652_p4 }
  0x61   : > { %1662 = shalt.err (!%p1659_p12)
}
  0x62   : > { %s1752_s4 = smov 128   ;;  %s1753_s21 = smov 8  }
  0x63   : > { %1491 = dma.hbm_to_vmem [thread:$0]  (!%p2172_p13), %s2152_s0, 256, %s1920_s15, [#allocation4], %s1752_s4, %s1752_s4, %s1753_s21  }
  0x64   : > { %p2173_p8 = scmp.ne.s32.totalorder %s2170_s12, 0 }
  0x65   : > { %p2174_p2 = scmp.eq.s32.totalorder (!%p2173_p8), %s1901_s11, 0 }
  0x66   : > { %327 = sbr.rel (%p2173_p8) target bundleno = 1432 (0x598), region = 44 }
  0x6d   : > { %1714 = dma.done.wait (%p2174_p2), [#allocation4], 256   ;;  %p2175_p11 = pmov %p2174_p2 }
  0x6e   : > { %s333_s23 = sand.u32 1, %s1901_s11   ;;  %s335_s22 = sand.u32 1, %s1731_s25  }
  0x6f   : > { %1716 = vsyncadd (%p2175_p11), [#allocation4], 4294967040  ;;  %s1978_s1 = sshll.u32 %s335_s22, 2  ;;  %s334_s16 = scalar_lea.sflag [#allocation7], %s333_s23 }
  0x70   : > { %s337_s19 = scalar_lea.vmem [#allocation6], %s1978_s1  ;;  %p2176_p13 = scmp.ne.s32.totalorder %s2169_s17, 0 }
  0x72   : > { %1718 = dma.done.wait (%p2176_p13), %s334_s16, 128  }
  0x73   : > { %1720 = vsyncadd (%p2176_p13), %s334_s16, 4294967168  ;;  %p393_p3 = scmp.lt.s32.totalorder %s1739_s27, 7  ;;  %s346_s10 = scalar_lea.vmem [#allocation8], %s1978_s1 }
  0x74   : > { %p1402_p5 = scmp.ne.s32.totalorder %s1739_s27, 0 }
  0x75   : > { %s1987_s12 = scalar_select %p393_p3, %s1739_s27, 7 }
  0x76   : > { %413 = sbr.rel (%p1402_p5) target bundleno = 125 (0x7d), region = 60  ;;  %v414_v0 = vld [vmem:[#allocation3] sm:$0xff] (!%p1402_p5)  ;;  %vm416_vm0 = vcmask (!%p1402_p5), 261120   ;;  %v415_v1 = vld [vmem:[#allocation3 + $0x8] sm:$0xff] (!%p1402_p5) }
  0x77   : > { %s395_s20 = scalar_lea.vmem %s2154_s2, %s1987_s12  ;;  %s398_s18 = scalar_lea.vmem %s2157_s5, %s1987_s12  ;;  %417 = vst.msk [vmem:[#allocation2] sm:$0xff] (!%p1402_p5), %vm416_vm0, %v414_v0  ;;  %418 = vst.msk [vmem:[#allocation2 + $0x8] sm:$0xff] (!%p1402_p5), %vm416_vm0, %v415_v1 }
  0x78   : > { %s1445_s4 = sshll.u32 %s1987_s12, 4 }
  0x79   : > { %s2001_s9 = scalar_lea.vmem %s2159_s7, %s1445_s4 }
  0x7d PF: > { %v421_v2 = vld [vmem:[%s337_s19] sm:$0xf]  ;;  %vm429_vm1 = vcmask 261120   ;;  %vm529_vm2 = vcmask 1043456   ;;  %v1754_v7 = vmov 0.0   ;;  %v2027_v8 = vld [vmem:[%s2155_s3 + $0x8] sm:$0xff]  ;;  %v784_v36 = vlaneseq }
  0x7e   : > { %v2005_v3 = vld [vmem:[#allocation2] sm:$0xff]  ;;  %1455 = vmatprep.subr.msk.mxu0 %vm429_vm1, %v421_v2  ;;  %v2014_v5 = vld [vmem:[#allocation2 + $0x8] sm:$0xff]  ;;  %610 = vmatprep.mubr.f32.mxu1 %v1754_v7  ;;  %v516_v9 = vld [vmem:[%s2155_s3 + $0x10] sm:$0xf]  ;;  %v521_v10 = vcombine.high %v2027_v8, %v2027_v8  ;;  %vm522_vm3 = vcmask 31744   ;;  %vm771_vm4 = vcmask 924672  }
  0x7f   : > { %1457 = vmatprep.mubr.msk.f32.mxu0 %vm429_vm1, %v2005_v3  ;;  %v514_v4 = vld [vmem:[%s2155_s3] sm:$0xff]  ;;  %1456 = vmatpush3.xpose.msk.msra.mxu0 %vm429_vm1, %v421_v2  ;;  %v2051_v37 = vand.u32 127, %v784_v36  ;;  %p1440_p0 = scmp.ne.s32.totalorder %s1739_s27, 7 }
  0x80   : > { %v520_v6 = vcombine.high %v514_v4, %v514_v4  ;;  %v1403_v11 = vld [vmem:[%s395_s20] ss:$0 sm:$0xff] }
  0x81   : > { %v2054_v38 = vadd.s32 256, %v2051_v37  ;;  %v2057_v39 = vadd.s32 128, %v2051_v37  ;;  %v2060_v40 = vadd.s32 384, %v2051_v37  ;;  %v2063_v41 = vadd.s32 512, %v2051_v37 }
  0x82   : > { %1407 = vmatprep.subr.msk.mxu0 %vm529_vm2, %v520_v6  ;;  %1470 = vmatprep.subr.msk.mxu1 %vm529_vm2, %v520_v6 }
  0x83   : > { %1458 = vmatmul.mubr.msk.f32.vlgmr.msra.gmra.mrb[0].mxu0 %vm429_vm1, %v2014_v5  ;;  %1471 = vmatpush1.msk.msra.mxu1 %vm529_vm2, %v514_v4 }
  0x84   : > { %1408 = vmatpush1.msk.msra.mxu0 %vm529_vm2, %v514_v4  ;;  %604 = vmatprep.mubr.f32.mxu0 %v1754_v7 }
  0x85   : > { %1460 = vmatprep.subr.msk.mxu1 %vm529_vm2, %v516_v9  ;;  %1411 = vmatprep.subr.msk.mxu0 %vm529_vm2, %v521_v10 }
 0x156   : > { %v1459_v12 = vpop.f32.mrb[0].mxu0 }
 0x157   : > { %v511_v13 = vadd.f32 %v1459_v12, %v1403_v11  ;;  %v505_v14 = vpop.f32.mrb[1].mxu0 }
 0x158   : > { %v506_v15 = vadd.f32 %v1403_v11, %v505_v14 }
 0x159   : > { %1410 = vmatmul.mubr.msk.f32.vlgmr.msra.gmra.mrb[0].mxu1 %vm522_vm3, %v511_v13 }
 0x15a   : > { %1409 = vmatmul.mubr.msk.f32.vlgmr.msra.gmra.mrb[2].mxu0 %vm522_vm3, %v506_v15  ;;  %1461 = vmatpush3.msk.msra.mxu1 %vm529_vm2, %v516_v9 }
 0x15b   : > { %1412 = vmatpush1.msk.msra.mxu0 %vm529_vm2, %v2027_v8  ;;  %1462 = vmatprep.mubr.msk.f32.mxu1 %vm522_vm3, %v506_v15 }
 0x15c   : > { %681 = vmatprep.mubr.f32.mxu0 %v1754_v7  ;;  %896 = vmatprep.subr.mxu1 %v520_v6 }
 0x15d   : > { %1463 = vmatmul.mubr.msk.f32.vlgmr.msra.gmra.mrb[2].mxu1 %vm522_vm3, %v511_v13  ;;  %1465 = vmatprep.subr.msk.mxu0 %vm771_vm4, %v516_v9 }
 0x15e   : > { %1413 = vmatmul.mubr.msk.f32.vlgmr.msra.gmra.mrb[4].mxu0 %vm522_vm3, %v506_v15 }
 0x15f   : > { %687 = vmatprep.mubr.f32.mxu0 %v1754_v7 }
 0x161   : > { %897 = vmatpush1.xpose.msra.mxu1 %v514_v4 }
 0x162   : > { %1414 = vmatmul.mubr.msk.f32.gmra.mrb[6].mxu0 %vm522_vm3, %v511_v13  ;;  %971 = vmatprep.subr.mxu1 %v521_v10 }
 0x163   : > { %1466 = vmatpush3.xpose.msk.msra.mxu0 %vm771_vm4, %v516_v9 }
 0x22c   : > { %v612_v16 = vpop.f32.mrb[0].mxu1 }
 0x22d   : > { %v606_v17 = vpop.f32.mrb[2].mxu0  ;;  %v614_v18 = vpop.f32.mrb[1].mxu1 }
 0x22e   : > { %v608_v19 = vpop.f32.mrb[3].mxu0 }
 0x230   : > { %v1464_v20 = vpop.f32.mrb[2].mxu1 }
 0x231   : > { %v683_v21 = vpop.f32.mrb[4].mxu0  ;;  %v760_v22 = vpop.f32.mrb[3].mxu1  ;;  %v779_v32 = vsel %vm771_vm4, %v1464_v20, -inf }
 0x232   : > { %v769_v23 = vmax.f32 %v606_v17, %v683_v21  ;;  %v772_v24 = vsel %vm771_vm4, %v760_v22, -inf  ;;  %v685_v25 = vpop.f32.mrb[5].mxu0 }
 0x233   : > { %v770_v26 = vmax.f32 %v608_v19, %v685_v25 }
 0x234   : > { %v773_v27 = vmax.f32 %v769_v23, %v772_v24 }
 0x235   : > { %v689_v28 = vpop.f32.mrb[6].mxu0 }
 0x236   : > { %v777_v29 = vmax.f32 %v612_v16, %v689_v28  ;;  %v691_v30 = vpop.f32.mrb[7].mxu0  ;;  %v774_v31 = vmax.f32 %v773_v27, %v770_v26 }
 0x237   : > { %v778_v33 = vmax.f32 %v614_v18, %v691_v30 }
 0x238   : > { %775 = vmax.xlane.f32.xlu0 %v774_v31  ;;  %v780_v34 = vmax.f32 %v777_v29, %v779_v32  ;;  %v1757_v29 = vmov 0  }
 0x239   : > { %1564 = vset.pattern.permute.xlu0 %v1757_v29 }
 0x23a   : > { %v781_v35 = vmax.f32 %v780_v34, %v778_v33 }
 0x23c   : > { %782 = vmax.xlane.f32.xlu0 %v781_v35 }
 0x2c5   : > { %v776_v42 = vpop.xlane.xlu0 %775 }
 0x2c6   : > { %vm790_vm5 = vcmp.eq.f32.partialorder %v606_v17, %v776_v42  ;;  %vm792_vm6 = vcmp.eq.f32.partialorder %v683_v21, %v776_v42  ;;  %vm794_vm7 = vcmp.eq.f32.partialorder %v760_v22, %v776_v42  ;;  %vm791_vm8 = vcmp.eq.f32.partialorder %v608_v19, %v776_v42 }
 0x2c7   : > { %v800_v43 = vsel %vm790_vm5, %v2051_v37, 625  ;;  %v802_v44 = vsel %vm792_vm6, %v2054_v38, 625  ;;  %vm793_vm9 = vcmp.eq.f32.partialorder %v685_v25, %v776_v42  ;;  %v801_v45 = vsel %vm791_vm8, %v2057_v39, 625 }
 0x2c8   : > { %v803_v46 = vsel %vm793_vm9, %v2060_v40, 625  ;;  %v804_v47 = vsel %vm794_vm7, %v2063_v41, 625  ;;  %vm810_vm10 = vcmp.lt.s32.totalorder %v800_v43, %v802_v44  ;;  %v1755_v25 = vmov 1.0  }
 0x2c9   : > { %v783_v48 = vpop.xlane.xlu0 %782  ;;  %v811_v49 = vsel %vm810_vm10, %v800_v43, %v802_v44  ;;  %vm812_vm11 = vcmp.lt.s32.totalorder %v801_v45, %v803_v46  ;;  %v814_v50 = vsel %vm771_vm4, %v804_v47, 2147483647  ;;  %v1121_v43 = vld [vmem:[%s346_s10] sm:$0xf] }
 0x2ca   : > { %vm795_vm12 = vcmp.eq.f32.partialorder %v612_v16, %v783_v48  ;;  %vm797_vm13 = vcmp.eq.f32.partialorder %v689_v28, %v783_v48  ;;  %vm799_vm14 = vcmp.eq.f32.partialorder %v1464_v20, %v783_v48  ;;  %v813_v51 = vsel %vm812_vm11, %v801_v45, %v803_v46 }
 0x2cb   : > { %v805_v52 = vsel %vm795_vm12, %v2051_v37, 625  ;;  %v807_v53 = vsel %vm797_vm13, %v2054_v38, 625  ;;  %vm815_vm15 = vcmp.lt.s32.totalorder %v811_v49, %v814_v50  ;;  %vm796_vm0 = vcmp.eq.f32.partialorder %v614_v18, %v783_v48 }
 0x2cc   : > { %v816_v54 = vsel %vm815_vm15, %v811_v49, %v814_v50  ;;  %vm798_vm2 = vcmp.eq.f32.partialorder %v691_v30, %v783_v48  ;;  %v806_v55 = vsel %vm796_vm0, %v2057_v39, 625  ;;  %v809_v56 = vsel %vm799_vm14, %v2063_v41, 625 }
 0x2cd   : > { %vm817_vm3 = vcmp.lt.s32.totalorder %v816_v54, %v813_v51  ;;  %v808_v57 = vsel %vm798_vm2, %v2060_v40, 625  ;;  %vm833_vm5 = vcmp.lt.s32.totalorder %v805_v52, %v807_v53  ;;  %v837_v58 = vsel %vm771_vm4, %v809_v56, 2147483647 }
 0x2ce   : > { %v818_v59 = vsel %vm817_vm3, %v816_v54, %v813_v51  ;;  %v834_v60 = vsel %vm833_vm5, %v805_v52, %v807_v53  ;;  %vm835_vm6 = vcmp.lt.s32.totalorder %v806_v55, %v808_v57  ;;  %vm1199_vm11 = vcmask 7168  }
 0x2cf   : > { %v820_v61 = vshra.s32 %v818_v59, 16  ;;  %v836_v62 = vsel %vm835_vm6, %v806_v55, %v808_v57  ;;  %vm838_vm7 = vcmp.lt.s32.totalorder %v834_v60, %v837_v58  ;;  %v819_v6 = vand.u32 65535, %v818_v59  ;;  %v1439_v59 = vld [vmem:[%s398_s18] ss:$0 sm:$0xff] }
 0x2d0   : > { %v839_v63 = vsel %vm838_vm7, %v834_v60, %v837_v58 }
 0x2d1   : > { %v822_v0 = vcvt.s32.f32 %v820_v61  ;;  %vm840_vm8 = vcmp.lt.s32.totalorder %v839_v63, %v836_v62  ;;  %v821_v10 = vcvt.s32.f32 %v819_v6 }
 0x2d2   : > { %v841_v1 = vsel %vm840_vm8, %v839_v63, %v836_v62 }
 0x2d3   : > { %823 = vmin.xlane.f32.xlu1 %v822_v0  ;;  %v843_v2 = vshra.s32 %v841_v1, 16  ;;  %v842_v11 = vand.u32 65535, %v841_v1 }
 0x2d5   : > { %v845_v4 = vcvt.s32.f32 %v843_v2  ;;  %v844_v14 = vcvt.s32.f32 %v842_v11 }
 0x2d7   : > { %846 = vmin.xlane.f32.xlu1 %v845_v4 }
 0x360   : > { %v824_v9 = vpop.xlane.xlu1 %823 }
 0x361   : > { %vm825_vm9 = vcmp.eq.f32.partialorder %v822_v0, %v824_v9  ;;  %v830_v16 = vcvt.f32.s32 %v824_v9 }
 0x362   : > { %v826_v12 = vsel %vm825_vm9, %v821_v10, inf }
 0x363   : > { %827 = vmin.xlane.f32.xlu0 %v826_v12  ;;  %v831_v19 = vshll.u32 %v830_v16, 16  ;;  %v1207_v16 = vld [vmem:[#allocation3 + $0x8] sm:$0xff] (!%p1440_p0) }
 0x364   : > { %v847_v13 = vpop.xlane.xlu1 %846 }
 0x365   : > { %vm848_vm10 = vcmp.eq.f32.partialorder %v845_v4, %v847_v13  ;;  %v853_v17 = vcvt.f32.s32 %v847_v13 }
 0x366   : > { %v849_v15 = vsel %vm848_vm10, %v844_v14, inf }
 0x367   : > { %850 = vmin.xlane.f32.xlu1 %v849_v15  ;;  %v854_v22 = vshll.u32 %v853_v17, 16 }
 0x3f0   : > { %v828_v18 = vpop.xlane.xlu0 %827 }
 0x3f1   : > { %v829_v20 = vcvt.f32.s32 %v828_v18 }
 0x3f3   : > { %v832_v21 = vadd.s32 %v831_v19, %v829_v20 }
 0x3f4   : > { %v851_v23 = vpop.xlane.xlu1 %850 }
 0x3f5   : > { %1200 = vst.msk [vmem:[%s2001_s9] sm:$0xff] %vm1199_vm11, %v832_v21  ;;  %v852_v24 = vcvt.f32.s32 %v851_v23  ;;  %vm857_vm12 = vcmp.eq.s32.totalorder %v2057_v39, %v832_v21  ;;  %vm856_vm13 = vcmp.eq.s32.totalorder %v2051_v37, %v832_v21  ;;  %vm860_vm14 = vcmp.eq.s32.totalorder %v2063_v41, %v832_v21 }
 0x3f6   : > { %1428 = vmatprep.mubr.msk.f32.mxu1 %vm857_vm12, %v1755_v25  ;;  %v1422_v26 = vsel %vm860_vm14, 1.0, %v1754_v7  ;;  %vm859_vm3 = vcmp.eq.s32.totalorder %v2060_v40, %v832_v21  ;;  %vm858_vm5 = vcmp.eq.s32.totalorder %v2054_v38, %v832_v21 }
 0x3f7   : > { %v855_v27 = vadd.s32 %v854_v22, %v852_v24  ;;  %1429 = vmatmul.mubr.msk.f32.vlgmr.msra.gmra.mrb[4].mxu1 %vm856_vm13, %v1755_v25  ;;  %1467 = vmatprep.mubr.msk.f32.mxu0 %vm771_vm4, %v1422_v26 }
 0x3f8   : > { %972 = vmatpush1.xpose.msra.mxu1 %v2027_v8  ;;  %v1756_v8 = vmov 1  }
 0x3f9   : > { %1201 = vst.msk [vmem:[%s2001_s9 + $0x8] sm:$0xff] %vm1199_vm11, %v855_v27  ;;  %vm862_vm15 = vcmp.eq.s32.totalorder %v2057_v39, %v855_v27  ;;  %vm861_vm0 = vcmp.eq.s32.totalorder %v2051_v37, %v855_v27  ;;  %vm865_vm2 = vcmp.eq.s32.totalorder %v2063_v41, %v855_v27  ;;  %vm864_vm6 = vcmp.eq.s32.totalorder %v2060_v40, %v855_v27 }
 0x3fa   : > { %1430 = vmatprep.mubr.msk.f32.mxu1 %vm862_vm15, %v1755_v25  ;;  %v1427_v28 = vsel %vm865_vm2, 1.0, %v1754_v7  ;;  %vm863_vm7 = vcmp.eq.s32.totalorder %v2054_v38, %v855_v27  ;;  %1565 = vset.pattern.permute.xlu1 %v1756_v8  ;;  %v1758_v39 = vmov 2   ;;  %v1759_v40 = vmov 3  }
 0x3fb   : > { %1431 = vmatmul.mubr.msk.f32.gmra.mrb[6].mxu1 %vm861_vm0, %v1755_v25  ;;  %1468 = vmatmul.mubr.msk.f32.vlgmr.msra.gmra.mrb[8].mxu0 %vm771_vm4, %v1427_v28  ;;  %v1133_v38 = vshrl.u32 %v784_v36, 7 }
 0x3fc   : > { %1432 = vmatprep.mubr.msk.f32.mxu1 %vm859_vm3, %v1755_v25 }
 0x3fd   : > { %v1148_v41 = vsub.s32 1, %v1133_v38  ;;  %v1134_v42 = vsub.s32 0, %v1133_v38  ;;  %v1164_v44 = vsub.s32 2, %v1133_v38  ;;  %v1180_v50 = vsub.s32 3, %v1133_v38 }
 0x3ff   : > { %1433 = vmatmul.mubr.msk.f32.vlgmr.msra.gmra.mrb[4].mxu1 %vm858_vm5, %v1755_v25  ;;  %v1149_v46 = vrot.slane %v1121_v43, %v1148_v41  ;;  %v1135_v47 = vrot.slane %v1121_v43, %v1134_v42  ;;  %v1165_v49 = vrot.slane %v1121_v43, %v1164_v44  ;;  %v1181_v55 = vrot.slane %v1121_v43, %v1180_v50 }
 0x400   : > { %1434 = vmatprep.mubr.msk.f32.mxu1 %vm864_vm6, %v1755_v25 }
 0x403   : > { %1435 = vmatmul.mubr.msk.f32.gmra.mrb[6].mxu1 %vm863_vm7, %v1755_v25 }
 0x4ce   : > { %v1469_v7 = vpop.f32.mrb[8].mxu0 }
 0x4cf   : > { %v1112_v30 = vpop.f32.mrb[9].mxu0 }
 0x4d2   : > { %v1037_v31 = vpop.f32.mrb[4].mxu1 }
 0x4d3   : > { %v1113_v32 = vadd.f32 %v1112_v30, %v1037_v31  ;;  %v1039_v33 = vpop.f32.mrb[5].mxu1 }
 0x4d5   : > { %1139 = vperm.xlu1 %1565, %v1113_v32   ;;  %1124 = vperm.xlu0 %1564, %v1113_v32  }
 0x4d6   : > { %v1042_v34 = vpop.f32.mrb[6].mxu1 }
 0x4d7   : > { %v1118_v35 = vadd.f32 %v1469_v7, %v1042_v34  ;;  %v1044_v37 = vpop.f32.mrb[7].mxu1 }
 0x4d9   : > { %1566 = vset.pattern.permute.xlu1 %v1758_v39  ;;  %1572 = vset.pattern.permute.xlu0 %v1759_v40 }
 0x4da   : > { %1155 = vperm.xlu1 %1566, %v1113_v32  }
 0x4de   : > { %1567 = vset.pattern.permute.xlu1 %v1759_v40 }
 0x4df   : > { %1171 = vperm.xlu1 %1567, %v1113_v32  }
 0x4e3   : > { %1568 = vset.pattern.permute.xlu1 %v1757_v29 }
 0x4e4   : > { %1129 = vperm.xlu1 %1568, %v1118_v35  }
 0x4e8   : > { %1569 = vset.pattern.permute.xlu1 %v1756_v8 }
 0x4e9   : > { %1143 = vperm.xlu1 %1569, %v1118_v35  }
 0x4ed   : > { %1570 = vset.pattern.permute.xlu1 %v1758_v39 }
 0x4ee   : > { %1159 = vperm.xlu1 %1570, %v1118_v35  }
 0x4f2   : > { %1571 = vset.pattern.permute.xlu1 %v1759_v40 }
 0x4f3   : > { %1175 = vperm.xlu1 %1571, %v1118_v35  }
 0x554   : > { %v1140_v45 = vpop.permute.xlu1 %1139  ;;  %v1125_v48 = vpop.permute.xlu0 %1124 }
 0x555   : > { %v1150_v51 = vmul.f32 %v1149_v46, %v1140_v45  ;;  %v1136_v52 = vmul.f32 %v1135_v47, %v1125_v48 }
 0x557   : > { %v1152_v56 = vadd.f32 %v1150_v51, %v1136_v52 }
 0x559   : > { %v1156_v53 = vpop.permute.xlu1 %1155 }
 0x55a   : > { %v1166_v54 = vmul.f32 %v1165_v49, %v1156_v53 }
 0x55c   : > { %v1168_v36 = vadd.f32 %v1166_v54, %v1152_v56 }
 0x55e   : > { %v1172_v57 = vpop.permute.xlu1 %1171 }
 0x55f   : > { %v1182_v58 = vmul.f32 %v1181_v55, %v1172_v57 }
 0x561   : > { %v1184_v60 = vadd.f32 %v1182_v58, %v1168_v36 }
 0x563   : > { %v1193_v61 = vadd.f32 %v1439_v59, %v1184_v60  ;;  %v1130_v62 = vpop.permute.xlu1 %1129 }
 0x564   : > { %v1137_v4 = vmul.f32 %v1135_v47, %v1130_v62 }
 0x565   : > { %v1195_v63 = vsub.f32 %v2005_v3, %v1193_v61  ;;  %v1206_v3 = vld [vmem:[#allocation3] sm:$0xff] (!%p1440_p0) }
 0x567   : > { %1197 = vst.msk [vmem:[#allocation2] sm:$0xff] %vm429_vm1, %v1195_v63  ;;  %v1208_v17 = vsub.f32 (!%p1440_p0), %v1206_v3, %v1195_v63 }
 0x568   : > { %v1144_v0 = vpop.permute.xlu1 %1143 }
 0x569   : > { %v1151_v1 = vmul.f32 %v1149_v46, %v1144_v0  ;;  %1210 = vst.msk [vmem:[#allocation9] sm:$0xff] (!%p1440_p0), %vm429_vm1, %v1208_v17 }
 0x56b   : > { %v1153_v9 = vadd.f32 %v1151_v1, %v1137_v4 }
 0x56d   : > { %v1160_v2 = vpop.permute.xlu1 %1159 }
 0x56e   : > { %v1167_v6 = vmul.f32 %v1165_v49, %v1160_v2 }
 0x570   : > { %v1169_v11 = vadd.f32 %v1167_v6, %v1153_v9 }
 0x572   : > { %v1176_v10 = vpop.permute.xlu1 %1175 }
 0x573   : > { %v1183_v12 = vmul.f32 %v1181_v55, %v1176_v10 }
 0x575   : > { %v1185_v13 = vadd.f32 %v1183_v12, %v1169_v11  ;;  %1205 = sbr.rel (%p1440_p0) target bundleno = 1406 (0x57e), region = 64 }
 0x577   : > { %v1194_v14 = vadd.f32 %v1439_v59, %v1185_v13 }
 0x579   : > { %v1196_v15 = vsub.f32 %v2014_v5, %v1194_v14 }
 0x57b   : > { %1198 = vst.msk [vmem:[#allocation2 + $0x8] sm:$0xff] %vm429_vm1, %v1196_v15  ;;  %v1209_v18 = vsub.f32 (!%p1440_p0), %v1207_v16, %v1196_v15 }
 0x57d   : > { %1211 = vst.msk [vmem:[#allocation9 + $0x8] sm:$0xff] %vm429_vm1, %v1209_v18 }
 0x57e PF: > { %p1502_p6 = scmp.eq.s32.totalorder %s1901_s11, 7  ;;  %s1760_s12 = smov [#allocation9]  }
 0x57f   : > { %s1230_s18 = sshll.u32 %s1760_s12, 4  ;;  %s1231_s18 = int_to_ptr.vmem [resolvable:$true] %s1230_s18 }
 0x580   : > { %s1663_s4 = scalar_lea.vmem %s1231_s18, 256  ;;  %p1670_p9 = scmp.lt.s32.totalorder %s1231_s18, %s1231_s18 }
 0x581   : > { %p1664_p1 = scmp.ne.s32.totalorder %s1231_s18, %s1663_s4  ;;  %p1671_p10 = scmp.lt.s32.totalorder %s1663_s4, %s1663_s4 }
 0x583   : > { %p1665_p4 = pnand %p1664_p1, %p1502_p6  ;;  %p1672_p12 = por %p1671_p10, %p1670_p9 }
 0x585   : > { %p1666_p7 = pneg %p1665_p4 }
 0x587   : > { %p1673_p8 = pnand %p1672_p12, %p1666_p7 }
 0x589   : > { %1676 = shalt.err (!%p1673_p8)
}
 0x58a   : > { %s1677_s21 = scalar_lea.hbm %s2158_s6, 256 }
 0x58b   : > { %p1678_p2 = scmp.ne.s32.totalorder %s2158_s6, %s1677_s21  ;;  %p1683_p3 = scmp.lt.u32.totalorder %s1677_s21, %s2158_s6 }
 0x58d   : > { %p1679_p11 = pnand %p1678_p2, %p1502_p6 }
 0x58f   : > { %p1680_p13 = pneg %p1679_p11 }
 0x591   : > { %p1685_p5 = pnand %p1683_p3, %p1680_p13 }
 0x593   : > { %1688 = shalt.err (!%p1685_p5)
}
 0x594   : > { %s1761_s16 = smov 128   ;;  %s1762_s19 = smov 8  }
 0x595   : > { %1485 = dma.vmem_to_hbm [thread:$0]  (%p1502_p6), %s1231_s18, 256, %s2158_s6, [#allocation5], %s1761_s16, %s1761_s16, %s1762_s19  }
 0x596   : > { %1722 = dma.done.wait (%p1502_p6), [#allocation5], 256  }
 0x597   : > { %1724 = vsyncadd (%p1502_p6), [#allocation5], 4294967040 }
 0x598 PF: > { %s23_s29 = sadd.s32 1, %s1747_s29   ;;  %s2177_s24 = smov %s1731_s25 }
 0x599   : > { %p20_p0 = scmp.ge.s32.totalorder %s23_s29, 10   ;;  %s2178_s25 = smov %s1735_s26 }
 0x59a   : > { %s2179_s26 = smov %s1847_s13  ;;  %s2180_s27 = smov %s1743_s28 }
 0x59b   : > { %s2181_s28 = smov %s2183_s30  ;;  %22 = sbr.rel (!%p20_p0) target bundleno = 9 (0x9), region = 125 }
 0x5a2   :  { %1262 = vsyncpa [#allocation4], 1 }
 0x5a3   :  { %1264 = vsyncpa [#allocation4 + $0x1], 1 }
 0x5a4   :  { %1265 = vsyncpa [#allocation7], 1 }
 0x5a5   :  { %1267 = vsyncpa [#allocation7 + $0x1], 1 }
 0x5a6   :  { %1268 = vsyncpa [#allocation5], 1 }
 0x5a7   :  { %1270 = vsyncpa [#allocation5 + $0x1], 1 }

</bundles_post_ra>
